<compile_context>
chip_gen: v7x
topology: tpu7x:2x2x1
jax: 0.10.0
libtpu: 0.0.40
codegen_flags: <defaults>
</compile_context>

<pallas_src>
import functools

import jax
import jax.numpy as jnp
from jax import lax
from jax.experimental import pallas as pl
from jax.experimental.pallas import tpu as pltpu

_LANES = 128


def _round_up(n, m):
    return ((n + m - 1) // m) * m


def _neural_ode_kernel(x_ref, w_in_ref, b_in_ref,
                       w_t_ref, w_x_ref, b_ode_ref,
                       w_dec_ref, b_dec_ref, o_ref,
                       *, n_ode_layers, mm_dtype):
    """NeuralODE forward for one batch tile; all operands VMEM-resident."""
    f32 = jnp.float32

    x = x_ref[...].astype(mm_dtype)                       # (TB, F_in)

    # ---- encoder: Linear + tanh ---------------------------------------------
    h = jnp.tanh(
        jnp.dot(x, w_in_ref[...].astype(mm_dtype),
                preferred_element_type=f32) + b_in_ref[...]
    )                                                      # (TB, H), f32

    # ---- ODE right-hand side f(t, y) ----------------------------------------
    # All (nlayer-1) LinearT layers share identical weights (deepcopy in torch).
    w_t = w_t_ref[...]                                     # (1, H) time-feature weights
    w_x_mm = w_x_ref[...].astype(mm_dtype)                 # (H, H) state weights (pre-T)
    b_o = b_ode_ref[...]                                   # (1, H)

    def apply_layers(y, tb):
        # tb = t * w_t + b_ode, hoisted (loop-invariant across layers).
        def layer(yy):
            return jnp.tanh(
                jnp.dot(yy.astype(mm_dtype), w_x_mm, preferred_element_type=f32) + tb
            )
        if n_ode_layers <= 4:
            for _ in range(n_ode_layers):
                y = layer(y)
        else:
            y = lax.fori_loop(0, n_ode_layers, lambda _, yy: layer(yy), y,
                              unroll=True)
        return y

    def odefunc(t, y):
        # t is a Python float (static): fold t==0 at trace time.
        tb = b_o if t == 0.0 else f32(t) * w_t + b_o
        return apply_layers(y, tb)

    # ---- one RK4 (3/8-rule, torchdiffeq rk4_alt_step_func) step, dt = 1 ------
    third = 1.0 / 3.0
    k1 = odefunc(0.0, h)
    k2 = odefunc(third, h + k1 * f32(third))
    k3 = odefunc(2.0 * third, h + (k2 - k1 * f32(third)))
    k4 = odefunc(1.0, h + (k1 - k2 + k3))
    y1 = h + (k1 + f32(3.0) * (k2 + k3) + k4) * f32(0.125)

    # ---- decoder: Linear (lane-dense padded output) ---------------------------
    o_ref[...] = (
        jnp.dot(y1.astype(mm_dtype), w_dec_ref[...].astype(mm_dtype),
                preferred_element_type=f32) + b_dec_ref[...]
    ).astype(o_ref.dtype)


def neural_ode_forward(x, params, *, nlayer, block_batch=256,
                       matmul_dtype=jnp.float32):
    """Batch-tiled Pallas forward. matmul_dtype=jnp.bfloat16 is recommended on
    v6e/v7x for large batches (f32 accumulation is kept either way)."""
    w_in, b_in, w_t, w_x, b_ode, w_dec, b_dec = params
    batch, in_feature = x.shape
    hidden = w_x.shape[0]
    out_feature = w_dec.shape[1]

    # Lane-dense decoder output: pad out_feature up to a multiple of 128 lanes.
    out_pad = _round_up(max(out_feature, _LANES), _LANES)
    w_dec_p = jnp.zeros((hidden, out_pad), w_dec.dtype).at[:, :out_feature].set(w_dec)
    b_dec_p = jnp.zeros((1, out_pad), b_dec.dtype).at[:, :out_feature].set(b_dec)

    # Batch tile: up to `block_batch` rows per grid step, multiple of 8 sublanes.
    tb = min(block_batch, _round_up(batch, 8))
    padded_batch = _round_up(batch, tb)
    if padded_batch != batch:
        x = jnp.pad(x, ((0, padded_batch - batch), (0, 0)))
    grid = (padded_batch // tb,)

    kernel = functools.partial(
        _neural_ode_kernel, n_ode_layers=nlayer - 1, mm_dtype=matmul_dtype)

    const = lambda i: (0, 0)  # weights: same block every grid step (stay resident)
    out = pl.pallas_call(
        kernel,
        out_shape=jax.ShapeDtypeStruct((padded_batch, out_pad), jnp.float32),
        grid_spec=pltpu.PrefetchScalarGridSpec(
            num_scalar_prefetch=0,
            grid=grid,
            in_specs=[
                pl.BlockSpec((tb, in_feature), lambda i: (i, 0)),   # x
                pl.BlockSpec((in_feature, hidden), const),          # w_in
                pl.BlockSpec((1, hidden), const),                   # b_in
                pl.BlockSpec((1, hidden), const),                   # w_t
                pl.BlockSpec((hidden, hidden), const),              # w_x
                pl.BlockSpec((1, hidden), const),                   # b_ode
                pl.BlockSpec((hidden, out_pad), const),             # w_dec (padded)
                pl.BlockSpec((1, out_pad), const),                  # b_dec (padded)
            ],
            out_specs=pl.BlockSpec((tb, out_pad), lambda i: (i, 0)),
        ),
        compiler_params=pltpu.CompilerParams(
            dimension_semantics=("parallel",)),  # shards batch across TCs on v7x
    )(x, w_in, b_in, w_t, w_x, b_ode, w_dec_p, b_dec_p)

    return out[:batch, :out_feature]


def init_params(key, in_feature, hidden, out_feature):
    """Deterministic param init mimicking torch.nn.Linear (U[-1/sqrt(fan_in), +])."""
    ks = jax.random.split(key, 6)

    def linear(kw, kb, fan_in, fan_out):
        bound = 1.0 / jnp.sqrt(jnp.float32(fan_in))
        w = jax.random.uniform(kw, (fan_in, fan_out), jnp.float32, -bound, bound)
        b = jax.random.uniform(kb, (1, fan_out), jnp.float32, -bound, bound)
        return w, b

    # encoder Linear(in_feature, hidden), stored transposed (in, out)
    w_in, b_in = linear(ks[0], ks[1], in_feature, hidden)
    # LinearT layer: Linear(hidden + 1, hidden); split the "time" column off.
    w_full, b_ode = linear(ks[2], ks[3], hidden + 1, hidden)
    w_t = w_full[:1, :]          # (1, hidden)  -- weights multiplying t
    w_x = w_full[1:, :]          # (hidden, hidden)
    # decoder Linear(hidden, out_feature)
    w_dec, b_dec = linear(ks[4], ks[5], hidden, out_feature)
    return (w_in, b_in, w_t, w_x, b_ode, w_dec, b_dec)


def _reference_forward(x, params, *, nlayer):
    """Pure-JAX reference of the same math (sanity check only)."""
    w_in, b_in, w_t, w_x, b_ode, w_dec, b_dec = params
    h = jnp.tanh(x @ w_in + b_in)

    def f(t, y):
        for _ in range(nlayer - 1):
            y = jnp.tanh(y @ w_x + t * w_t + b_ode)
        return y

    third = 1.0 / 3.0
    k1 = f(0.0, h)
    k2 = f(third, h + k1 * third)
    k3 = f(2 * third, h + (k2 - k1 * third))
    k4 = f(1.0, h + (k1 - k2 + k3))
    y1 = h + (k1 + 3.0 * (k2 + k3) + k4) * 0.125
    return y1 @ w_dec + b_dec


if __name__ == "__main__":
    # Small, module-consistent shapes.
    batch, in_feature, hidden, out_feature, nlayer = 8, 16, 32, 8, 3

    key = jax.random.PRNGKey(0)
    kx, kp = jax.random.split(key)
    x = jax.random.normal(kx, (batch, in_feature), jnp.float32)
    params = init_params(kp, in_feature, hidden, out_feature)

    out = neural_ode_forward(x, params, nlayer=nlayer)
    out = jax.block_until_ready(out)

    ref = _reference_forward(x, params, nlayer=nlayer)
    assert out.shape == (batch, out_feature)
    assert jnp.allclose(out, ref, atol=1e-5, rtol=1e-5), "mismatch vs JAX reference"

    print("KERNEL_OK")
</pallas_src>

<mosaic_0001>
module attributes {stable_mosaic.version = 11 : i64} {
  func.func @_neural_ode_kernel(%arg0: i32, %arg1: memref<8x16xf32, #tpu.memory_space<vmem>>, %arg2: memref<16x32xf32, #tpu.memory_space<vmem>>, %arg3: memref<1x32xf32, #tpu.memory_space<vmem>>, %arg4: memref<1x32xf32, #tpu.memory_space<vmem>>, %arg5: memref<32x32xf32, #tpu.memory_space<vmem>>, %arg6: memref<1x32xf32, #tpu.memory_space<vmem>>, %arg7: memref<32x128xf32, #tpu.memory_space<vmem>>, %arg8: memref<1x128xf32, #tpu.memory_space<vmem>>, %arg9: memref<8x128xf32, #tpu.memory_space<vmem>>) attributes {dimension_semantics = [#tpu.dimension_semantics<parallel>], iteration_bounds = array<i64: 1>, scalar_prefetch = 0 : i64, scratch_operands = 0 : i64, tpu.core_type = #tpu.core_type<tc>, window_params = [{transform_indices = @transform_0, window_bounds = array<i64: 8, 16>}, {pipeline_mode = #tpu.pipeline_mode<synchronous>, transform_indices = @transform_1, window_bounds = array<i64: 16, 32>}, {pipeline_mode = #tpu.pipeline_mode<synchronous>, transform_indices = @transform_2, window_bounds = array<i64: 1, 32>}, {pipeline_mode = #tpu.pipeline_mode<synchronous>, transform_indices = @transform_3, window_bounds = array<i64: 1, 32>}, {pipeline_mode = #tpu.pipeline_mode<synchronous>, transform_indices = @transform_4, window_bounds = array<i64: 32, 32>}, {pipeline_mode = #tpu.pipeline_mode<synchronous>, transform_indices = @transform_5, window_bounds = array<i64: 1, 32>}, {pipeline_mode = #tpu.pipeline_mode<synchronous>, transform_indices = @transform_6, window_bounds = array<i64: 32, 128>}, {pipeline_mode = #tpu.pipeline_mode<synchronous>, transform_indices = @transform_7, window_bounds = array<i64: 1, 128>}, {transform_indices = @transform_8, window_bounds = array<i64: 8, 128>}]} {
    %c0 = arith.constant 0 : index
    %c0_0 = arith.constant 0 : index
    %0 = vector.load %arg1[%c0, %c0_0] : memref<8x16xf32, #tpu.memory_space<vmem>>, vector<8x16xf32>
    %c0_1 = arith.constant 0 : index
    %c0_2 = arith.constant 0 : index
    %1 = vector.load %arg2[%c0_1, %c0_2] : memref<16x32xf32, #tpu.memory_space<vmem>>, vector<16x32xf32>
    %cst = arith.constant dense<0.000000e+00> : vector<8x32xf32>
    %2 = tpu.matmul %0, %1, %cst {dimension_numbers = #tpu.dot_dimension_numbers<[1], [0], [0], [1], [0, 0, 1, 1], [], []>} : vector<8x16xf32>, vector<16x32xf32>, vector<8x32xf32> -> vector<8x32xf32>
    %c0_3 = arith.constant 0 : index
    %c0_4 = arith.constant 0 : index
    %3 = vector.load %arg3[%c0_3, %c0_4] : memref<1x32xf32, #tpu.memory_space<vmem>>, vector<1x32xf32>
    %4 = vector.broadcast %3 : vector<1x32xf32> to vector<8x32xf32>
    %5 = arith.addf %2, %4 : vector<8x32xf32>
    %6 = math.tanh %5 : vector<8x32xf32>
    %c0_5 = arith.constant 0 : index
    %c0_6 = arith.constant 0 : index
    %7 = vector.load %arg4[%c0_5, %c0_6] : memref<1x32xf32, #tpu.memory_space<vmem>>, vector<1x32xf32>
    %c0_7 = arith.constant 0 : index
    %c0_8 = arith.constant 0 : index
    %8 = vector.load %arg5[%c0_7, %c0_8] : memref<32x32xf32, #tpu.memory_space<vmem>>, vector<32x32xf32>
    %c0_9 = arith.constant 0 : index
    %c0_10 = arith.constant 0 : index
    %9 = vector.load %arg6[%c0_9, %c0_10] : memref<1x32xf32, #tpu.memory_space<vmem>>, vector<1x32xf32>
    %cst_11 = arith.constant dense<0.000000e+00> : vector<8x32xf32>
    %10 = tpu.matmul %6, %8, %cst_11 {dimension_numbers = #tpu.dot_dimension_numbers<[1], [0], [0], [1], [0, 0, 1, 1], [], []>} : vector<8x32xf32>, vector<32x32xf32>, vector<8x32xf32> -> vector<8x32xf32>
    %11 = vector.broadcast %9 : vector<1x32xf32> to vector<8x32xf32>
    %12 = arith.addf %10, %11 : vector<8x32xf32>
    %13 = math.tanh %12 : vector<8x32xf32>
    %cst_12 = arith.constant dense<0.000000e+00> : vector<8x32xf32>
    %14 = tpu.matmul %13, %8, %cst_12 {dimension_numbers = #tpu.dot_dimension_numbers<[1], [0], [0], [1], [0, 0, 1, 1], [], []>} : vector<8x32xf32>, vector<32x32xf32>, vector<8x32xf32> -> vector<8x32xf32>
    %15 = vector.broadcast %9 : vector<1x32xf32> to vector<8x32xf32>
    %16 = arith.addf %14, %15 : vector<8x32xf32>
    %17 = math.tanh %16 : vector<8x32xf32>
    %cst_13 = arith.constant 0.333333343 : f32
    %18 = vector.broadcast %cst_13 : f32 to vector<8x32xf32>
    %19 = arith.mulf %17, %18 : vector<8x32xf32>
    %20 = arith.addf %6, %19 : vector<8x32xf32>
    %cst_14 = arith.constant 0.333333343 : f32
    %21 = vector.broadcast %cst_14 : f32 to vector<1x32xf32>
    %22 = arith.mulf %21, %7 : vector<1x32xf32>
    %23 = arith.addf %22, %9 : vector<1x32xf32>
    %cst_15 = arith.constant dense<0.000000e+00> : vector<8x32xf32>
    %24 = tpu.matmul %20, %8, %cst_15 {dimension_numbers = #tpu.dot_dimension_numbers<[1], [0], [0], [1], [0, 0, 1, 1], [], []>} : vector<8x32xf32>, vector<32x32xf32>, vector<8x32xf32> -> vector<8x32xf32>
    %25 = vector.broadcast %23 : vector<1x32xf32> to vector<8x32xf32>
    %26 = arith.addf %24, %25 : vector<8x32xf32>
    %27 = math.tanh %26 : vector<8x32xf32>
    %cst_16 = arith.constant dense<0.000000e+00> : vector<8x32xf32>
    %28 = tpu.matmul %27, %8, %cst_16 {dimension_numbers = #tpu.dot_dimension_numbers<[1], [0], [0], [1], [0, 0, 1, 1], [], []>} : vector<8x32xf32>, vector<32x32xf32>, vector<8x32xf32> -> vector<8x32xf32>
    %29 = vector.broadcast %23 : vector<1x32xf32> to vector<8x32xf32>
    %30 = arith.addf %28, %29 : vector<8x32xf32>
    %31 = math.tanh %30 : vector<8x32xf32>
    %cst_17 = arith.constant 0.333333343 : f32
    %32 = vector.broadcast %cst_17 : f32 to vector<8x32xf32>
    %33 = arith.mulf %17, %32 : vector<8x32xf32>
    %34 = arith.subf %31, %33 : vector<8x32xf32>
    %35 = arith.addf %6, %34 : vector<8x32xf32>
    %cst_18 = arith.constant 0.666666686 : f32
    %36 = vector.broadcast %cst_18 : f32 to vector<1x32xf32>
    %37 = arith.mulf %36, %7 : vector<1x32xf32>
    %38 = arith.addf %37, %9 : vector<1x32xf32>
    %cst_19 = arith.constant dense<0.000000e+00> : vector<8x32xf32>
    %39 = tpu.matmul %35, %8, %cst_19 {dimension_numbers = #tpu.dot_dimension_numbers<[1], [0], [0], [1], [0, 0, 1, 1], [], []>} : vector<8x32xf32>, vector<32x32xf32>, vector<8x32xf32> -> vector<8x32xf32>
    %40 = vector.broadcast %38 : vector<1x32xf32> to vector<8x32xf32>
    %41 = arith.addf %39, %40 : vector<8x32xf32>
    %42 = math.tanh %41 : vector<8x32xf32>
    %cst_20 = arith.constant dense<0.000000e+00> : vector<8x32xf32>
    %43 = tpu.matmul %42, %8, %cst_20 {dimension_numbers = #tpu.dot_dimension_numbers<[1], [0], [0], [1], [0, 0, 1, 1], [], []>} : vector<8x32xf32>, vector<32x32xf32>, vector<8x32xf32> -> vector<8x32xf32>
    %44 = vector.broadcast %38 : vector<1x32xf32> to vector<8x32xf32>
    %45 = arith.addf %43, %44 : vector<8x32xf32>
    %46 = math.tanh %45 : vector<8x32xf32>
    %47 = arith.subf %17, %31 : vector<8x32xf32>
    %48 = arith.addf %47, %46 : vector<8x32xf32>
    %49 = arith.addf %6, %48 : vector<8x32xf32>
    %cst_21 = arith.constant 1.000000e+00 : f32
    %50 = vector.broadcast %cst_21 : f32 to vector<1x32xf32>
    %51 = arith.mulf %50, %7 : vector<1x32xf32>
    %52 = arith.addf %51, %9 : vector<1x32xf32>
    %cst_22 = arith.constant dense<0.000000e+00> : vector<8x32xf32>
    %53 = tpu.matmul %49, %8, %cst_22 {dimension_numbers = #tpu.dot_dimension_numbers<[1], [0], [0], [1], [0, 0, 1, 1], [], []>} : vector<8x32xf32>, vector<32x32xf32>, vector<8x32xf32> -> vector<8x32xf32>
    %54 = vector.broadcast %52 : vector<1x32xf32> to vector<8x32xf32>
    %55 = arith.addf %53, %54 : vector<8x32xf32>
    %56 = math.tanh %55 : vector<8x32xf32>
    %cst_23 = arith.constant dense<0.000000e+00> : vector<8x32xf32>
    %57 = tpu.matmul %56, %8, %cst_23 {dimension_numbers = #tpu.dot_dimension_numbers<[1], [0], [0], [1], [0, 0, 1, 1], [], []>} : vector<8x32xf32>, vector<32x32xf32>, vector<8x32xf32> -> vector<8x32xf32>
    %58 = vector.broadcast %52 : vector<1x32xf32> to vector<8x32xf32>
    %59 = arith.addf %57, %58 : vector<8x32xf32>
    %60 = math.tanh %59 : vector<8x32xf32>
    %61 = arith.addf %31, %46 : vector<8x32xf32>
    %cst_24 = arith.constant 3.000000e+00 : f32
    %62 = vector.broadcast %cst_24 : f32 to vector<8x32xf32>
    %63 = arith.mulf %62, %61 : vector<8x32xf32>
    %64 = arith.addf %17, %63 : vector<8x32xf32>
    %65 = arith.addf %64, %60 : vector<8x32xf32>
    %cst_25 = arith.constant 1.250000e-01 : f32
    %66 = vector.broadcast %cst_25 : f32 to vector<8x32xf32>
    %67 = arith.mulf %65, %66 : vector<8x32xf32>
    %68 = arith.addf %6, %67 : vector<8x32xf32>
    %c0_26 = arith.constant 0 : index
    %c0_27 = arith.constant 0 : index
    %69 = vector.load %arg7[%c0_26, %c0_27] : memref<32x128xf32, #tpu.memory_space<vmem>>, vector<32x128xf32>
    %cst_28 = arith.constant dense<0.000000e+00> : vector<8x128xf32>
    %70 = tpu.matmul %68, %69, %cst_28 {dimension_numbers = #tpu.dot_dimension_numbers<[1], [0], [0], [1], [0, 0, 1, 1], [], []>} : vector<8x32xf32>, vector<32x128xf32>, vector<8x128xf32> -> vector<8x128xf32>
    %c0_29 = arith.constant 0 : index
    %c0_30 = arith.constant 0 : index
    %71 = vector.load %arg8[%c0_29, %c0_30] : memref<1x128xf32, #tpu.memory_space<vmem>>, vector<1x128xf32>
    %72 = vector.broadcast %71 : vector<1x128xf32> to vector<8x128xf32>
    %73 = arith.addf %70, %72 : vector<8x128xf32>
    %c0_31 = arith.constant 0 : index
    %c0_32 = arith.constant 0 : index
    %74 = vector.load %arg9[%c0_31, %c0_32] : memref<8x128xf32, #tpu.memory_space<vmem>>, vector<8x128xf32>
    tpu.vector_store %arg9[%c0_31, %c0_32], %73 {strides = array<i32>} : memref<8x128xf32, #tpu.memory_space<vmem>>, vector<8x128xf32>,
    return
  }
  func.func @transform_0(%arg0: i32) -> (i32, i32) {
    %c0_i32 = arith.constant 0 : i32
    %c0_i32_0 = arith.constant 0 : i32
    return %arg0, %c0_i32 : i32, i32
  }
  func.func @transform_1(%arg0: i32) -> (i32, i32) {
    %c0_i32 = arith.constant 0 : i32
    %c0_i32_0 = arith.constant 0 : i32
    %c0_i32_1 = arith.constant 0 : i32
    return %c0_i32, %c0_i32_0 : i32, i32
  }
  func.func @transform_2(%arg0: i32) -> (i32, i32) {
    %c0_i32 = arith.constant 0 : i32
    %c0_i32_0 = arith.constant 0 : i32
    %c0_i32_1 = arith.constant 0 : i32
    return %c0_i32, %c0_i32_0 : i32, i32
  }
  func.func @transform_3(%arg0: i32) -> (i32, i32) {
    %c0_i32 = arith.constant 0 : i32
    %c0_i32_0 = arith.constant 0 : i32
    %c0_i32_1 = arith.constant 0 : i32
    return %c0_i32, %c0_i32_0 : i32, i32
  }
  func.func @transform_4(%arg0: i32) -> (i32, i32) {
    %c0_i32 = arith.constant 0 : i32
    %c0_i32_0 = arith.constant 0 : i32
    %c0_i32_1 = arith.constant 0 : i32
    return %c0_i32, %c0_i32_0 : i32, i32
  }
  func.func @transform_5(%arg0: i32) -> (i32, i32) {
    %c0_i32 = arith.constant 0 : i32
    %c0_i32_0 = arith.constant 0 : i32
    %c0_i32_1 = arith.constant 0 : i32
    return %c0_i32, %c0_i32_0 : i32, i32
  }
  func.func @transform_6(%arg0: i32) -> (i32, i32) {
    %c0_i32 = arith.constant 0 : i32
    %c0_i32_0 = arith.constant 0 : i32
    %c0_i32_1 = arith.constant 0 : i32
    return %c0_i32, %c0_i32_0 : i32, i32
  }
  func.func @transform_7(%arg0: i32) -> (i32, i32) {
    %c0_i32 = arith.constant 0 : i32
    %c0_i32_0 = arith.constant 0 : i32
    %c0_i32_1 = arith.constant 0 : i32
    return %c0_i32, %c0_i32_0 : i32, i32
  }
  func.func @transform_8(%arg0: i32) -> (i32, i32) {
    %c0_i32 = arith.constant 0 : i32
    %c0_i32_0 = arith.constant 0 : i32
    return %arg0, %c0_i32 : i32, i32
  }
}

</mosaic_0001>

<bundles_post_ra>
// kernel: tpu_custom_call.1
= control target key start
LH: loop header
LB: loop body
LE: loop exit
PB: predicated region body
PF: predicated region fallthrough
CT: control target
= control target key end

     0   :  { %13 = vsyncpa [#allocation3], 0  ;;  %s1508_s0 = inlined_call_operand.hbm [shape: f32[8,16], index: 0, kind: input, shape index: {}]   ;;  %s1509_s1 = inlined_call_operand.hbm [shape: f32[16,32], index: 1, kind: input, shape index: {}]   ;;  %s1510_s2 = inlined_call_operand.vmem [shape: f32[1,32], index: 2, kind: input, shape index: {}]   ;;  %s1511_s3 = inlined_call_operand.vmem [shape: f32[1,32], index: 3, kind: input, shape index: {}]   ;;  %s1512_s4 = inlined_call_operand.hbm [shape: f32[32,32], index: 4, kind: input, shape index: {}]   ;;  %s1513_s5 = inlined_call_operand.vmem [shape: f32[1,32], index: 5, kind: input, shape index: {}]   ;;  %s1514_s6 = inlined_call_operand.hbm [shape: f32[32,128], index: 6, kind: input, shape index: {}]   ;;  %s1515_s7 = inlined_call_operand.vmem [shape: f32[1,128], index: 7, kind: input, shape index: {}]   ;;  %s1516_s8 = inlined_call_operand.hbm [shape: f32[8,128], index: 8, kind: output, shape index: {}]  }
   0x1   :  { %14 = vsyncpa [#allocation6], 0 }
   0x2   :  { %15 = vsyncpa [#allocation9], 0 }
   0x3   :  { %16 = vsyncpa [#allocation4], 0  ;;  %s1280_s27 = smov [#allocation5]   ;;  %s1162_s9 = scalar_lea.hbm %s1509_s1, 256 }
   0x4   :  { %s32_s28 = sshll.u32 %s1280_s27, 4  ;;  %p1163_p0 = scmp.ne.s32.totalorder %s1509_s1, %s1162_s9  ;;  %s33_s28 = int_to_ptr.vmem [resolvable:$true] %s32_s28 }
   0x5   :  { %p1166_p1 = scmp.lt.u32.totalorder %s1162_s9, %s1509_s1 }
   0x7   :  { %p1168_p2 = pnand %p1166_p1, %p1163_p0 }
   0x9   :  { %1171 = shalt.err (!%p1168_p2)
}
   0xa   :  { %s1172_s14 = scalar_lea.vmem %s33_s28, 256  ;;  %p1177_p4 = scmp.lt.s32.totalorder %s33_s28, %s33_s28 }
   0xb   :  { %p1173_p3 = scmp.ne.s32.totalorder %s33_s28, %s1172_s14  ;;  %p1178_p5 = scmp.lt.s32.totalorder %s1172_s14, %s1172_s14 }
   0xd   :  { %p1179_p6 = por %p1178_p5, %p1177_p4 }
   0xf   :  { %p1180_p7 = pnand %p1179_p6, %p1173_p3 }
  0x11   :  { %1183 = shalt.err (!%p1180_p7)
}
  0x12   :  { %s1281_s15 = smov 128   ;;  %s1282_s16 = smov 8  }
  0x13   :  { %38 = dma.hbm_to_vmem [thread:$0]  %s1509_s1, 256, %s33_s28, [#allocation6], %s1281_s15, %s1281_s15, %s1282_s16  }
  0x14   :  { %s1283_s19 = smov [#allocation2]   ;;  %s1284_s21 = smov [#allocation7]  }
  0x15   :  { %s23_s20 = sshll.u32 %s1283_s19, 4  ;;  %s48_s22 = sshll.u32 %s1284_s21, 4  ;;  %s24_s20 = int_to_ptr.vmem [resolvable:$true] %s23_s20  ;;  %s49_s22 = int_to_ptr.vmem [resolvable:$true] %s48_s22 }
  0x16   :  { %s1184_s25 = scalar_lea.hbm %s1508_s0, 128 }
  0x17   :  { %p1185_p8 = scmp.ne.s32.totalorder %s1508_s0, %s1184_s25  ;;  %p1188_p9 = scmp.lt.u32.totalorder %s1184_s25, %s1508_s0 }
  0x19   :  { %p1190_p10 = pnand %p1188_p9, %p1185_p8 }
  0x1b   :  { %1193 = shalt.err (!%p1190_p10)
}
  0x1c   :  { %s1194_s1 = scalar_lea.vmem %s24_s20, 128  ;;  %p1199_p12 = scmp.lt.s32.totalorder %s24_s20, %s24_s20 }
  0x1d   :  { %p1195_p11 = scmp.ne.s32.totalorder %s24_s20, %s1194_s1  ;;  %p1200_p13 = scmp.lt.s32.totalorder %s1194_s1, %s1194_s1 }
  0x1f   :  { %p1201_p0 = por %p1200_p13, %p1199_p12 }
  0x21   :  { %p1202_p1 = pnand %p1201_p0, %p1195_p11 }
  0x23   :  { %1205 = shalt.err (!%p1202_p1)
}
  0x24   :  { %26 = dma.hbm_to_vmem [thread:$0]  %s1508_s0, 128, %s24_s20, [#allocation3]  }
  0x25   :  { %s1206_s12 = scalar_lea.hbm %s1512_s4, 512 }
  0x26   :  { %p1207_p2 = scmp.ne.s32.totalorder %s1512_s4, %s1206_s12  ;;  %p1210_p3 = scmp.lt.u32.totalorder %s1206_s12, %s1512_s4 }
  0x28   :  { %p1212_p4 = pnand %p1210_p3, %p1207_p2 }
  0x2a   :  { %1215 = shalt.err (!%p1212_p4)
}
  0x2b   :  { %s1216_s19 = scalar_lea.vmem %s49_s22, 512  ;;  %p1221_p6 = scmp.lt.s32.totalorder %s49_s22, %s49_s22 }
  0x2c   :  { %p1217_p5 = scmp.ne.s32.totalorder %s49_s22, %s1216_s19  ;;  %p1222_p7 = scmp.lt.s32.totalorder %s1216_s19, %s1216_s19 }
  0x2e   :  { %p1223_p8 = por %p1222_p7, %p1221_p6 }
  0x30   :  { %p1224_p9 = pnand %p1223_p8, %p1217_p5 }
  0x32   :  { %1227 = shalt.err (!%p1224_p9)
}
  0x33   :  { %54 = dma.hbm_to_vmem [thread:$0]  %s1512_s4, 512, %s49_s22, [#allocation6], %s1281_s15, %s1281_s15, %s1282_s16  }
  0x34   :  { %s1285_s21 = smov [#allocation8]   ;;  %s1228_s26 = scalar_lea.hbm %s1514_s6, 512 }
  0x35   :  { %s62_s23 = sshll.u32 %s1285_s21, 4  ;;  %p1229_p10 = scmp.ne.s32.totalorder %s1514_s6, %s1228_s26  ;;  %s63_s23 = int_to_ptr.vmem [resolvable:$true] %s62_s23 }
  0x36   :  { %p1232_p11 = scmp.lt.u32.totalorder %s1228_s26, %s1514_s6 }
  0x38   :  { %p1234_p12 = pnand %p1232_p11, %p1229_p10 }
  0x3a   :  { %1237 = shalt.err (!%p1234_p12)
}
  0x3b   :  { %s1238_s28 = scalar_lea.vmem %s63_s23, 512  ;;  %p1243_p0 = scmp.lt.s32.totalorder %s63_s23, %s63_s23 }
  0x3c   :  { %p1239_p13 = scmp.ne.s32.totalorder %s63_s23, %s1238_s28  ;;  %p1244_p1 = scmp.lt.s32.totalorder %s1238_s28, %s1238_s28 }
  0x3e   :  { %p1245_p2 = por %p1244_p1, %p1243_p0 }
  0x40   :  { %p1246_p3 = pnand %p1245_p2, %p1239_p13 }
  0x42   :  { %1249 = shalt.err (!%p1246_p3)
}
  0x43   :  { %68 = dma.hbm_to_vmem [thread:$0]  %s1514_s6, 512, %s63_s23, [#allocation9], %s1281_s15, %s1281_s15, %s1282_s16  }
  0x44   :  { %1272 = dma.done.wait [#allocation3], 128  }
  0x45   :  { %1273 = vsyncadd [#allocation3], 4294967168 }
  0x46   :  { %1274 = dma.done.wait [#allocation6], 768  }
  0x47   :  { %1275 = vsyncadd [#allocation6], 4294966528 }
  0x48   :  { %1276 = dma.done.wait [#allocation9], 512  }
  0x49   :  { %1277 = vsyncadd [#allocation9], 4294966784  ;;  %v1286_v0 = vmov 0.0|0.0   ;;  %vm1287_vm0 = vmmov 0   ;;  %v1288_v1 = vmov 0.0   ;;  %v84_v2 = vld [vmem:[#allocation5] sm:$0xff]  ;;  %v175_v17 = vlaneseq }
  0x4a   :  { %1077 = vmatprep.subr.bf16.mxu0 %v1286_v0  ;;  %975 = vmatprep.mubr.msk.f32.mxu0 %vm1287_vm0, %v1288_v1  ;;  %v85_v3 = vld [vmem:[#allocation5 + $0x8] sm:$0xff]  ;;  %v83_v5 = vld [vmem:[#allocation2] sm:$0xff]  ;;  %vm93_vm1 = vcmask 130048   ;;  %v169_v6 = vld [vmem:[#allocation7] sm:$0xff]  ;;  %vm180_vm2 = vcmask 261120   ;;  %s1289_s11 = smov [#allocation10]  }
  0x4b   :  { %1080 = vmatprep.subr.bf16.mxu1 %v1286_v0  ;;  %986 = vmatprep.mubr.msk.f32.mxu1 %vm1287_vm0, %v1288_v1  ;;  %v1078_v4 = vpack.c.bf16 %v85_v3, %v84_v2  ;;  %v170_v7 = vld [vmem:[#allocation7 + $0x8] sm:$0xff]  ;;  %v171_v8 = vld [vmem:[#allocation7 + $0x10] sm:$0xff]  ;;  %v172_v10 = vld [vmem:[#allocation7 + $0x18] sm:$0xff]  ;;  %v176_v18 = vshrl.u32 %v175_v17, 7  ;;  %s900_s12 = sshll.u32 %s1289_s11, 4  ;;  %s901_s12 = int_to_ptr.vmem [resolvable:$true] %s900_s12 }
  0x4c   :  { %v1401_v9 = vpack.c.bf16 %v170_v7, %v169_v6  ;;  %v1404_v11 = vpack.c.bf16 %v172_v10, %v171_v8  ;;  %v911_v12 = vld [vmem:[%s1510_s2] ss:$0 sm:$0xff]  ;;  %v811_v7 = vld [vmem:[#allocation8 + $0x10] sm:$0xff]  ;;  %v812_v8 = vld [vmem:[#allocation8 + $0x18] sm:$0xff]  ;;  %s1250_s13 = scalar_lea.vmem %s901_s12, 128  ;;  %p1255_p5 = scmp.lt.s32.totalorder %s901_s12, %s901_s12 }
  0x4d   :  { %1079 = vmatpush3.bf16.msra.mxu0 %v1078_v4  ;;  %v1426_v19 = vsub.s32 0, %v176_v18  ;;  %v1431_v20 = vld [vmem:[%s1513_s5] sm:$0x1]  ;;  %v809_v4 = vld [vmem:[#allocation8] sm:$0xff]  ;;  %p1251_p4 = scmp.ne.s32.totalorder %s901_s12, %s1250_s13  ;;  %p1256_p6 = scmp.lt.s32.totalorder %s1250_s13, %s1250_s13 }
  0x4e   :  { %1086 = vmatprep.subr.bf16.mxu0 %v1286_v0  ;;  %1082 = vmatpush3.bf16.msra.mxu1 %v1401_v9  ;;  %v168_v32 = vld [vmem:[%s1511_s3] sm:$0x1] }
  0x4f   :  { %1083 = vmatprep.subr.bf16.mxu1 %v1286_v0  ;;  %v178_v21 = vrot.slane %v1431_v20, %v1426_v19  ;;  %v331_v33 = vmul.f32 0.33333334, %v168_v32  ;;  %v489_v46 = vmul.f32 0.6666667, %v168_v32  ;;  %v648_v60 = vadd.f32 %v1431_v20, %v168_v32  ;;  %p1257_p7 = por %p1256_p6, %p1255_p5 }
  0x50   :  { %976 = vmatmul.mubr.msk.f32.vlgmr.msra.gmra.mrb[0].mxu0 %vm93_vm1, %v83_v5  ;;  %v810_v5 = vld [vmem:[#allocation8 + $0x8] sm:$0xff] }
  0x51   :  { %997 = vmatprep.mubr.msk.f32.mxu0 %vm1287_vm0, %v1288_v1  ;;  %1088 = vmatpush3.bf16.msra.mxu0 %v1401_v9  ;;  %v332_v34 = vadd.f32 %v331_v33, %v1431_v20  ;;  %v490_v47 = vadd.f32 %v489_v46, %v1431_v20  ;;  %v653_v61 = vrot.slane %v648_v60, %v1426_v19  ;;  %p1258_p8 = pnand %p1257_p7, %p1251_p4 }
  0x52   :  { %1089 = vmatprep.subr.bf16.mxu0 %v1286_v0  ;;  %1085 = vmatpush3.bf16.msra.mxu1 %v1404_v11  ;;  %v1129_v6 = vpack.c.bf16 %v810_v5, %v809_v4 }
  0x53   :  { %1092 = vmatprep.subr.bf16.mxu1 %v1286_v0  ;;  %v337_v35 = vrot.slane %v332_v34, %v1426_v19  ;;  %v495_v48 = vrot.slane %v490_v47, %v1426_v19 }
  0x55   :  { %1091 = vmatpush3.bf16.msra.mxu0 %v1404_v11 }
  0x56   :  { %1098 = vmatprep.subr.bf16.mxu0 %v1286_v0 }
 0x123   :  { %v163_v13 = vpop.f32.mrb[0].mxu0 }
 0x124   :  { %v164_v14 = vadd.f32 %v911_v12, %v163_v13  ;;  %v977_v15 = vpop.f32.mrb[1].mxu0 }
 0x126   :  { %1144 = vtanh.f32 %v164_v14 }
 0x130   :  { %v1416_v16 = vpop.eup %1144 }
 0x131   :  { %987 = vmatmul.mubr.msk.f32.vlgmr.msra.gmra.mrb[0].mxu1 %vm180_vm2, %v1416_v16 }
 0x132   :  { %1094 = vmatpush3.bf16.msra.mxu1 %v1401_v9  ;;  %1008 = vmatprep.mubr.msk.f32.mxu1 %vm1287_vm0, %v1288_v1 }
 0x133   :  { %1095 = vmatprep.subr.bf16.mxu1 %v1286_v0 }
 0x136   :  { %1097 = vmatpush3.bf16.msra.mxu1 %v1404_v11 }
 0x137   :  { %1104 = vmatprep.subr.bf16.mxu1 %v1286_v0 }
 0x204   :  { %v250_v22 = vpop.f32.mrb[0].mxu1 }
 0x205   :  { %v251_v23 = vadd.f32 %v250_v22, %v178_v21  ;;  %v988_v24 = vpop.f32.mrb[1].mxu1 }
 0x207   :  { %1146 = vtanh.f32 %v251_v23 }
 0x211   :  { %v1147_v25 = vpop.eup %1146 }
 0x212   :  { %998 = vmatmul.mubr.msk.f32.vlgmr.msra.gmra.mrb[2].mxu0 %vm180_vm2, %v1147_v25 }
 0x213   :  { %1100 = vmatpush3.bf16.msra.mxu0 %v1401_v9  ;;  %1019 = vmatprep.mubr.msk.f32.mxu0 %vm1287_vm0, %v1288_v1 }
 0x214   :  { %1101 = vmatprep.subr.bf16.mxu0 %v1286_v0 }
 0x217   :  { %1103 = vmatpush3.bf16.msra.mxu0 %v1404_v11 }
 0x218   :  { %1110 = vmatprep.subr.bf16.mxu0 %v1286_v0 }
 0x2e5   :  { %v324_v26 = vpop.f32.mrb[2].mxu0 }
 0x2e6   :  { %v325_v27 = vadd.f32 %v324_v26, %v178_v21  ;;  %v999_v28 = vpop.f32.mrb[3].mxu0 }
 0x2e8   :  { %1148 = vtanh.f32 %v325_v27 }
 0x2f2   :  { %v1442_v29 = vpop.eup %1148 }
 0x2f3   :  { %v329_v30 = vmul.f32 0.33333334, %v1442_v29 }
 0x2f5   :  { %v330_v31 = vadd.f32 %v1416_v16, %v329_v30 }
 0x2f7   :  { %1009 = vmatmul.mubr.msk.f32.vlgmr.msra.gmra.mrb[2].mxu1 %vm180_vm2, %v330_v31 }
 0x2f8   :  { %1106 = vmatpush3.bf16.msra.mxu1 %v1401_v9  ;;  %1030 = vmatprep.mubr.msk.f32.mxu1 %vm1287_vm0, %v1288_v1 }
 0x2f9   :  { %1107 = vmatprep.subr.bf16.mxu1 %v1286_v0 }
 0x2fc   :  { %1109 = vmatpush3.bf16.msra.mxu1 %v1404_v11 }
 0x2fd   :  { %1116 = vmatprep.subr.bf16.mxu1 %v1286_v0 }
 0x3ca   :  { %v408_v36 = vpop.f32.mrb[2].mxu1 }
 0x3cb   :  { %v409_v37 = vadd.f32 %v408_v36, %v337_v35  ;;  %v1010_v38 = vpop.f32.mrb[3].mxu1 }
 0x3cd   :  { %1150 = vtanh.f32 %v409_v37 }
 0x3d7   :  { %v1151_v39 = vpop.eup %1150 }
 0x3d8   :  { %1020 = vmatmul.mubr.msk.f32.vlgmr.msra.gmra.mrb[4].mxu0 %vm180_vm2, %v1151_v39 }
 0x3d9   :  { %1112 = vmatpush3.bf16.msra.mxu0 %v1401_v9  ;;  %1041 = vmatprep.mubr.msk.f32.mxu0 %vm1287_vm0, %v1288_v1 }
 0x3da   :  { %1113 = vmatprep.subr.bf16.mxu0 %v1286_v0 }
 0x3dd   :  { %1115 = vmatpush3.bf16.msra.mxu0 %v1404_v11 }
 0x3de   :  { %1122 = vmatprep.subr.bf16.mxu0 %v1286_v0 }
 0x4ab   :  { %v482_v40 = vpop.f32.mrb[4].mxu0 }
 0x4ac   :  { %v483_v41 = vadd.f32 %v482_v40, %v337_v35  ;;  %v1021_v42 = vpop.f32.mrb[5].mxu0 }
 0x4ae   :  { %1152 = vtanh.f32 %v483_v41 }
 0x4b8   :  { %v1153_v43 = vpop.eup %1152 }
 0x4b9   :  { %v487_v44 = vsub.f32 %v1153_v43, %v329_v30  ;;  %v645_v56 = vsub.f32 %v1442_v29, %v1153_v43 }
 0x4bb   :  { %v488_v45 = vadd.f32 %v1416_v16, %v487_v44 }
 0x4bd   :  { %1031 = vmatmul.mubr.msk.f32.vlgmr.msra.gmra.mrb[4].mxu1 %vm180_vm2, %v488_v45 }
 0x4be   :  { %1118 = vmatpush3.bf16.msra.mxu1 %v1401_v9  ;;  %1052 = vmatprep.mubr.msk.f32.mxu1 %vm1287_vm0, %v1288_v1 }
 0x4bf   :  { %1119 = vmatprep.subr.bf16.mxu1 %v1286_v0 }
 0x4c2   :  { %1121 = vmatpush3.bf16.msra.mxu1 %v1404_v11 }
 0x4c3   :  { %1128 = vmatprep.subr.bf16.mxu1 %v1286_v0 }
 0x590   :  { %v566_v49 = vpop.f32.mrb[4].mxu1 }
 0x591   :  { %v567_v50 = vadd.f32 %v566_v49, %v495_v48  ;;  %v1032_v51 = vpop.f32.mrb[5].mxu1 }
 0x593   :  { %1154 = vtanh.f32 %v567_v50 }
 0x59d   :  { %v1155_v52 = vpop.eup %1154 }
 0x59e   :  { %1042 = vmatmul.mubr.msk.f32.vlgmr.msra.gmra.mrb[6].mxu0 %vm180_vm2, %v1155_v52 }
 0x59f   :  { %1124 = vmatpush3.bf16.msra.mxu0 %v1401_v9  ;;  %1063 = vmatprep.mubr.msk.f32.mxu0 %vm1287_vm0, %v1288_v1 }
 0x5a0   :  { %1125 = vmatprep.subr.bf16.mxu0 %v1286_v0 }
 0x5a3   :  { %1127 = vmatpush3.bf16.msra.mxu0 %v1404_v11 }
 0x671   :  { %v640_v53 = vpop.f32.mrb[6].mxu0 }
 0x672   :  { %v641_v54 = vadd.f32 %v640_v53, %v495_v48  ;;  %v1043_v55 = vpop.f32.mrb[7].mxu0 }
 0x674   :  { %1156 = vtanh.f32 %v641_v54 }
 0x67e   :  { %v1157_v57 = vpop.eup %1156 }
 0x67f   :  { %v646_v58 = vadd.f32 %v1157_v57, %v645_v56  ;;  %v803_v12 = vadd.f32 %v1157_v57, %v1153_v43 }
 0x681   :  { %v647_v59 = vadd.f32 %v1416_v16, %v646_v58  ;;  %v804_v13 = vmul.f32 3.0, %v803_v12 }
 0x683   :  { %1053 = vmatmul.mubr.msk.f32.vlgmr.msra.gmra.mrb[6].mxu1 %vm180_vm2, %v647_v59  ;;  %v805_v14 = vadd.f32 %v1442_v29, %v804_v13 }
 0x684   :  { %1074 = vmatprep.mubr.msk.f32.mxu1 %vm1287_vm0, %v1288_v1  ;;  %1130 = vmatpush3.bf16.msra.mxu1 %v1129_v6  ;;  %v1132_v1 = vpack.c.bf16 %v812_v8, %v811_v7 }
 0x685   :  { %1131 = vmatprep.subr.bf16.mxu1 %v1286_v0  ;;  %v921_v0 = vld [vmem:[%s1515_s7] ss:$0 sm:$0xff] }
 0x688   :  { %1133 = vmatpush3.bf16.msra.mxu1 %v1132_v1 }
 0x756   :  { %v724_v62 = vpop.f32.mrb[6].mxu1 }
 0x757   :  { %v725_v63 = vadd.f32 %v724_v62, %v653_v61  ;;  %v1054_v2 = vpop.f32.mrb[7].mxu1 }
 0x759   :  { %1158 = vtanh.f32 %v725_v63 }
 0x763   :  { %v1159_v3 = vpop.eup %1158 }
 0x764   :  { %1064 = vmatmul.mubr.msk.f32.vlgmr.msra.gmra.mrb[8].mxu0 %vm180_vm2, %v1159_v3 }
 0x837   :  { %v798_v9 = vpop.f32.mrb[8].mxu0 }
 0x838   :  { %v799_v10 = vadd.f32 %v798_v9, %v653_v61  ;;  %v1065_v11 = vpop.f32.mrb[9].mxu0 }
 0x83a   :  { %1160 = vtanh.f32 %v799_v10 }
 0x844   :  { %v1161_v15 = vpop.eup %1160 }
 0x845   :  { %v806_v17 = vadd.f32 %v1161_v15, %v805_v14 }
 0x847   :  { %v807_v18 = vmul.f32 0.125, %v806_v17 }
 0x849   :  { %v808_v19 = vadd.f32 %v1416_v16, %v807_v18 }
 0x84b   :  { %1075 = vmatmul.mubr.msk.f32.vlgmr.msra.gmra.mrb[8].mxu1 %vm180_vm2, %v808_v19 }
 0x91e   :  { %v889_v20 = vpop.f32.mrb[8].mxu1 }
 0x91f   :  { %v890_v21 = vadd.f32 %v921_v0, %v889_v20  ;;  %v1076_v22 = vpop.f32.mrb[9].mxu1 }
 0x921   :  { %893 = vst [vmem:[#allocation10] sm:$0xff] %v890_v21 }
 0x922   :  { %1261 = shalt.err (!%p1258_p8)
}
 0x923   :  { %s1262_s18 = scalar_lea.hbm %s1516_s8, 128 }
 0x924   :  { %p1263_p9 = scmp.ne.s32.totalorder %s1516_s8, %s1262_s18  ;;  %p1266_p10 = scmp.lt.u32.totalorder %s1262_s18, %s1516_s8 }
 0x926   :  { %p1268_p11 = pnand %p1266_p10, %p1263_p9 }
 0x928   :  { %1271 = shalt.err (!%p1268_p11)
}
 0x929   :  { %903 = dma.vmem_to_hbm [thread:$0]  %s901_s12, 128, %s1516_s8, [#allocation4]  }
 0x92a   :  { %1278 = dma.done.wait [#allocation4], 128  }
 0x92b   :  { %1279 = vsyncadd [#allocation4], 4294967168 }
 0x92c   :  { %907 = vsyncpa [#allocation3], 1 }
 0x92d   :  { %908 = vsyncpa [#allocation6], 1 }
 0x92e   :  { %909 = vsyncpa [#allocation9], 1 }
 0x92f   :  { %910 = vsyncpa [#allocation4], 1 }

</bundles_post_ra>
